<compile_context>
chip_gen: v5e
topology: v5e:2x2
jax: 0.10.0
libtpu: 0.0.40
codegen_flags: <defaults>
</compile_context>

<pallas_src>
import jax
import jax.numpy as jnp
from jax.experimental import pallas as pl
from jax.experimental.pallas import tpu as pltpu

EMBEDDING_DIM = 10
INPUT_DIM = 50
HIDDEN_DIM = 25
NEG_SLOPE = 0.01  # nn.LeakyReLU() default


def _leaky_relu(v):
    return jnp.where(v > 0, v, NEG_SLOPE * v)


def encoder_ev_kernel(x_ref, w1_ref, b1_ref, w2_ref, b2_ref, o_ref):
    # Hot path: two MXU matmuls + VPU leaky-relu, all in VMEM.
    x = x_ref[...]
    h = jnp.dot(x, w1_ref[...], preferred_element_type=jnp.float32) + b1_ref[...]
    h = _leaky_relu(h)
    # Cast h to the weight dtype so both dot operands match (no-op for f32,
    # keeps the MXU on the fast bf16 path when io_dtype=bf16 is requested).
    y = jnp.dot(h.astype(w2_ref.dtype), w2_ref[...],
                preferred_element_type=jnp.float32) + b2_ref[...]
    o_ref[...] = _leaky_relu(y).astype(o_ref.dtype)


def _round_up(n, m):
    return ((n + m - 1) // m) * m


def _tpu_vmem_capacity_bytes():
    try:
        return int(pltpu.get_tpu_info().vmem_capacity_bytes)
    except Exception:
        return 128 << 20  # conservative v5e/v6e default if the query is unavailable


def _choose_block_b(B, target, split_for_two_cores):
    """Batch-tile rows: multiple of 8, large enough to amortize step overhead.

    If the chip has two TensorCores (v7x-class), make sure there are at least
    two grid steps (when B > 8) so the parallel batch axis uses both cores.
    """
    if B <= 8:
        return B
    if B <= target:
        if split_for_two_cores:
            return min(_round_up((B + 1) // 2, 8), B)
        return B
    return max((target // 8) * 8, 8)


def _vmem_limit_bytes(block_b, x_itemsize, w_itemsize, vmem_cap):
    """Lane-padded, double-buffered VMEM footprint + 25% headroom, capped."""
    pr = lambda n: _round_up(n, 8)      # sublane padding
    pc = lambda n: _round_up(n, 128)    # lane padding
    x_tile = 2 * pr(block_b) * pc(INPUT_DIM) * x_itemsize
    o_tile = 2 * pr(block_b) * pc(EMBEDDING_DIM) * 4
    w_bytes = 2 * (pr(INPUT_DIM) * pc(HIDDEN_DIM) * w_itemsize       # W1 -> 56x128
                   + pr(1) * pc(HIDDEN_DIM) * 4                      # b1 ->  8x128
                   + pr(HIDDEN_DIM) * pc(EMBEDDING_DIM) * w_itemsize  # W2 -> 32x128
                   + pr(1) * pc(EMBEDDING_DIM) * 4)                  # b2 ->  8x128
    need = x_tile + o_tile + w_bytes
    limit = int(need * 1.25) + (2 << 20)  # 25% headroom + 2 MiB slack
    # Physical caps: ~48 MiB on v7x (64 MiB/TC), ~100 MiB on v5e/v6e (128 MiB).
    cap = (48 << 20) if vmem_cap <= (64 << 20) else (100 << 20)
    return max(min(limit, cap), 4 << 20), cap


def encoder_ev(x, w1, b1, w2, b2, *, block_b=None, io_dtype=None):
    """Forward pass of EncoderEv.

    x:  [B, 50].  w1: [50, 25], b1: [1, 25], w2: [25, 10], b2: [1, 10]
    (weights pre-transposed to [in, out]).
    io_dtype: optional jnp.bfloat16 fast path for x/W (default f32 keeps exact
    parity with the PyTorch module).  Output is always f32.
    """
    B, D = x.shape
    assert D == INPUT_DIM

    if io_dtype is not None:
        x = x.astype(io_dtype)
        w1 = w1.astype(io_dtype)
        w2 = w2.astype(io_dtype)
    b1 = b1.astype(jnp.float32)
    b2 = b2.astype(jnp.float32)

    x_itemsize = jnp.dtype(x.dtype).itemsize
    w_itemsize = jnp.dtype(w1.dtype).itemsize

    vmem_cap = _tpu_vmem_capacity_bytes()
    is_v7x_like = vmem_cap <= (64 << 20)      # 64 MiB VMEM/TC => 2 TCs, 3.2 TB/s HBM
    target = 16384 if is_v7x_like else 8192

    if block_b is None:
        block_b = _choose_block_b(B, target, split_for_two_cores=is_v7x_like)
    block_b = min(int(block_b), B)
    if block_b < B:
        # Partial tiles must have rows divisible by 8 (sublane granularity).
        block_b = max((block_b // 8) * 8, 8)

    vmem_limit, cap = _vmem_limit_bytes(block_b, x_itemsize, w_itemsize, vmem_cap)
    # Shrink the tile if its padded double-buffered footprint would not fit.
    per_row = int(2 * 128 * (x_itemsize + 4) * 1.25)
    max_rows = max((((cap - (4 << 20)) // per_row) // 8) * 8, 8)
    if block_b > max_rows:
        block_b = int(max_rows)
        vmem_limit, _ = _vmem_limit_bytes(block_b, x_itemsize, w_itemsize, vmem_cap)

    grid = (pl.cdiv(B, block_b),)

    flops = 2 * B * (INPUT_DIM * HIDDEN_DIM + HIDDEN_DIM * EMBEDDING_DIM)
    weight_bytes = ((INPUT_DIM * HIDDEN_DIM + HIDDEN_DIM * EMBEDDING_DIM) * w_itemsize
                    + (HIDDEN_DIM + EMBEDDING_DIM) * 4)
    bytes_accessed = B * (INPUT_DIM * x_itemsize + EMBEDDING_DIM * 4) + weight_bytes

    return pl.pallas_call(
        encoder_ev_kernel,
        out_shape=jax.ShapeDtypeStruct((B, EMBEDDING_DIM), jnp.float32),
        grid=grid,
        in_specs=[
            pl.BlockSpec((block_b, INPUT_DIM), lambda i: (i, 0)),         # x tile
            pl.BlockSpec((INPUT_DIM, HIDDEN_DIM), lambda i: (0, 0)),      # W1 (resident)
            pl.BlockSpec((1, HIDDEN_DIM), lambda i: (0, 0)),              # b1
            pl.BlockSpec((HIDDEN_DIM, EMBEDDING_DIM), lambda i: (0, 0)),  # W2
            pl.BlockSpec((1, EMBEDDING_DIM), lambda i: (0, 0)),           # b2
        ],
        out_specs=pl.BlockSpec((block_b, EMBEDDING_DIM), lambda i: (i, 0)),
        compiler_params=pltpu.CompilerParams(
            dimension_semantics=("parallel",),   # batch axis shards across TCs
            vmem_limit_bytes=vmem_limit,
        ),
        cost_estimate=pl.CostEstimate(
            flops=flops, transcendentals=0, bytes_accessed=bytes_accessed),
    )(x, w1, b1, w2, b2)


def init_params(key):
    # Deterministic synthetic init mimicking nn.Linear shapes:
    #   L1[0]: weight (25, 50), bias (25,)   -> stored transposed (50, 25)
    #   L1[2]: weight (10, 25), bias (10,)   -> stored transposed (25, 10)
    k1, k2, k3, k4 = jax.random.split(key, 4)
    w1_t = jax.random.normal(k1, (INPUT_DIM, HIDDEN_DIM), jnp.float32) * 0.1
    b1 = jax.random.normal(k2, (1, HIDDEN_DIM), jnp.float32) * 0.1
    w2_t = jax.random.normal(k3, (HIDDEN_DIM, EMBEDDING_DIM), jnp.float32) * 0.1
    b2 = jax.random.normal(k4, (1, EMBEDDING_DIM), jnp.float32) * 0.1
    return w1_t, b1, w2_t, b2


def reference(x, w1, b1, w2, b2):
    h = _leaky_relu(x @ w1 + b1)
    return _leaky_relu(h @ w2 + b2)


if __name__ == "__main__":
    key = jax.random.PRNGKey(0)
    kx, kp = jax.random.split(key)
    w1, b1, w2, b2 = init_params(kp)

    # Small correctness check (single tile, or 2 tiles on v7x-class chips).
    B = 16
    x = jax.random.normal(kx, (B, INPUT_DIM), jnp.float32)
    out = jax.block_until_ready(encoder_ev(x, w1, b1, w2, b2))
    ref = reference(x, w1, b1, w2, b2)
    assert out.shape == (B, EMBEDDING_DIM)
    assert jnp.allclose(out, ref, atol=1e-5, rtol=1e-5)

    # Tiled path with a forced small tile: grid > 1 and a ragged tail block.
    B2 = 1000
    x2 = jax.random.normal(kx, (B2, INPUT_DIM), jnp.float32)
    out2 = jax.block_until_ready(encoder_ev(x2, w1, b1, w2, b2, block_b=128))
    ref2 = reference(x2, w1, b1, w2, b2)
    assert out2.shape == (B2, EMBEDDING_DIM)
    assert jnp.allclose(out2, ref2, atol=1e-5, rtol=1e-5)

    # Opt-in bf16 fast path (halves the dominant HBM stream; looser tolerance).
    out3 = jax.block_until_ready(
        encoder_ev(x2, w1, b1, w2, b2, io_dtype=jnp.bfloat16))
    assert out3.shape == (B2, EMBEDDING_DIM)
    assert jnp.allclose(out3, ref2, atol=5e-2, rtol=5e-2)

    print("KERNEL_OK")
</pallas_src>

<mosaic_0001>
module attributes {stable_mosaic.version = 11 : i64} {
  func.func @encoder_ev_kernel(%arg0: i32, %arg1: memref<16x50xf32, #tpu.memory_space<vmem>>, %arg2: memref<50x25xf32, #tpu.memory_space<vmem>>, %arg3: memref<1x25xf32, #tpu.memory_space<vmem>>, %arg4: memref<25x10xf32, #tpu.memory_space<vmem>>, %arg5: memref<1x10xf32, #tpu.memory_space<vmem>>, %arg6: memref<16x10xf32, #tpu.memory_space<vmem>>) attributes {dimension_semantics = [#tpu.dimension_semantics<parallel>], iteration_bounds = array<i64: 1>, scalar_prefetch = 0 : i64, scratch_operands = 0 : i64, tpu.core_type = #tpu.core_type<tc>, window_params = [{transform_indices = @transform_0, window_bounds = array<i64: 16, 50>}, {pipeline_mode = #tpu.pipeline_mode<synchronous>, transform_indices = @transform_1, window_bounds = array<i64: 50, 25>}, {pipeline_mode = #tpu.pipeline_mode<synchronous>, transform_indices = @transform_2, window_bounds = array<i64: 1, 25>}, {pipeline_mode = #tpu.pipeline_mode<synchronous>, transform_indices = @transform_3, window_bounds = array<i64: 25, 10>}, {pipeline_mode = #tpu.pipeline_mode<synchronous>, transform_indices = @transform_4, window_bounds = array<i64: 1, 10>}, {transform_indices = @transform_5, window_bounds = array<i64: 16, 10>}]} {
    %c0 = arith.constant 0 : index
    %c0_0 = arith.constant 0 : index
    %0 = vector.load %arg1[%c0, %c0_0] : memref<16x50xf32, #tpu.memory_space<vmem>>, vector<16x50xf32>
    %c0_1 = arith.constant 0 : index
    %c0_2 = arith.constant 0 : index
    %1 = vector.load %arg2[%c0_1, %c0_2] : memref<50x25xf32, #tpu.memory_space<vmem>>, vector<50x25xf32>
    %cst = arith.constant dense<0.000000e+00> : vector<16x25xf32>
    %2 = tpu.matmul %0, %1, %cst {dimension_numbers = #tpu.dot_dimension_numbers<[1], [0], [0], [1], [0, 0, 1, 1], [], []>} : vector<16x50xf32>, vector<50x25xf32>, vector<16x25xf32> -> vector<16x25xf32>
    %c0_3 = arith.constant 0 : index
    %c0_4 = arith.constant 0 : index
    %3 = vector.load %arg3[%c0_3, %c0_4] : memref<1x25xf32, #tpu.memory_space<vmem>>, vector<1x25xf32>
    %4 = vector.broadcast %3 : vector<1x25xf32> to vector<16x25xf32>
    %5 = arith.addf %2, %4 : vector<16x25xf32>
    %cst_5 = arith.constant 0.000000e+00 : f32
    %6 = vector.broadcast %cst_5 : f32 to vector<16x25xf32>
    %7 = arith.cmpf ogt, %5, %6 : vector<16x25xf32>
    %cst_6 = arith.constant 0.00999999977 : f32
    %8 = vector.broadcast %cst_6 : f32 to vector<16x25xf32>
    %9 = arith.mulf %8, %5 : vector<16x25xf32>
    %10 = arith.select %7, %5, %9 : vector<16x25xi1>, vector<16x25xf32>
    %c0_7 = arith.constant 0 : index
    %c0_8 = arith.constant 0 : index
    %11 = vector.load %arg4[%c0_7, %c0_8] : memref<25x10xf32, #tpu.memory_space<vmem>>, vector<25x10xf32>
    %cst_9 = arith.constant dense<0.000000e+00> : vector<16x10xf32>
    %12 = tpu.matmul %10, %11, %cst_9 {dimension_numbers = #tpu.dot_dimension_numbers<[1], [0], [0], [1], [0, 0, 1, 1], [], []>} : vector<16x25xf32>, vector<25x10xf32>, vector<16x10xf32> -> vector<16x10xf32>
    %c0_10 = arith.constant 0 : index
    %c0_11 = arith.constant 0 : index
    %13 = vector.load %arg5[%c0_10, %c0_11] : memref<1x10xf32, #tpu.memory_space<vmem>>, vector<1x10xf32>
    %14 = vector.broadcast %13 : vector<1x10xf32> to vector<16x10xf32>
    %15 = arith.addf %12, %14 : vector<16x10xf32>
    %cst_12 = arith.constant 0.000000e+00 : f32
    %16 = vector.broadcast %cst_12 : f32 to vector<16x10xf32>
    %17 = arith.cmpf ogt, %15, %16 : vector<16x10xf32>
    %cst_13 = arith.constant 0.00999999977 : f32
    %18 = vector.broadcast %cst_13 : f32 to vector<16x10xf32>
    %19 = arith.mulf %18, %15 : vector<16x10xf32>
    %20 = arith.select %17, %15, %19 : vector<16x10xi1>, vector<16x10xf32>
    %c0_14 = arith.constant 0 : index
    %c0_15 = arith.constant 0 : index
    %21 = vector.load %arg6[%c0_14, %c0_15] : memref<16x10xf32, #tpu.memory_space<vmem>>, vector<16x10xf32>
    tpu.vector_store %arg6[%c0_14, %c0_15], %20 {strides = array<i32>} : memref<16x10xf32, #tpu.memory_space<vmem>>, vector<16x10xf32>,
    return
  }
  func.func @transform_0(%arg0: i32) -> (i32, i32) {
    %c0_i32 = arith.constant 0 : i32
    %c0_i32_0 = arith.constant 0 : i32
    return %arg0, %c0_i32 : i32, i32
  }
  func.func @transform_1(%arg0: i32) -> (i32, i32) {
    %c0_i32 = arith.constant 0 : i32
    %c0_i32_0 = arith.constant 0 : i32
    %c0_i32_1 = arith.constant 0 : i32
    return %c0_i32, %c0_i32_0 : i32, i32
  }
  func.func @transform_2(%arg0: i32) -> (i32, i32) {
    %c0_i32 = arith.constant 0 : i32
    %c0_i32_0 = arith.constant 0 : i32
    %c0_i32_1 = arith.constant 0 : i32
    return %c0_i32, %c0_i32_0 : i32, i32
  }
  func.func @transform_3(%arg0: i32) -> (i32, i32) {
    %c0_i32 = arith.constant 0 : i32
    %c0_i32_0 = arith.constant 0 : i32
    %c0_i32_1 = arith.constant 0 : i32
    return %c0_i32, %c0_i32_0 : i32, i32
  }
  func.func @transform_4(%arg0: i32) -> (i32, i32) {
    %c0_i32 = arith.constant 0 : i32
    %c0_i32_0 = arith.constant 0 : i32
    %c0_i32_1 = arith.constant 0 : i32
    return %c0_i32, %c0_i32_0 : i32, i32
  }
  func.func @transform_5(%arg0: i32) -> (i32, i32) {
    %c0_i32 = arith.constant 0 : i32
    %c0_i32_0 = arith.constant 0 : i32
    return %arg0, %c0_i32 : i32, i32
  }
}

</mosaic_0001>

<bundles_post_ra>
// kernel: tpu_custom_call.1
= control target key start
LH: loop header
LB: loop body
LE: loop exit
PB: predicated region body
PF: predicated region fallthrough
CT: control target
= control target key end

     0   :  { %vm41_vm0 = vcmask 1041408   ;;  %vm89_vm1 = vcmask 1040384   ;;  %s272_s0 = inlined_call_operand.vmem [shape: f32[16,50], index: 0, kind: input, shape index: {}]   ;;  %s273_s1 = inlined_call_operand.vmem [shape: f32[50,25], index: 1, kind: input, shape index: {}]   ;;  %s274_s2 = inlined_call_operand.vmem [shape: f32[1,25], index: 2, kind: input, shape index: {}]   ;;  %s275_s3 = inlined_call_operand.vmem [shape: f32[25,10], index: 3, kind: input, shape index: {}]   ;;  %s276_s4 = inlined_call_operand.vmem [shape: f32[1,10], index: 4, kind: input, shape index: {}]   ;;  %s277_s5 = inlined_call_operand.hbm [shape: f32[16,10], index: 5, kind: output, shape index: {}]  }
   0x1   :  { %v29_v0 = vld [vmem:[%s273_s1 + $0x30] sm:$0x3]  ;;  %v28_v1 = vld [vmem:[%s273_s1 + $0x28] sm:$0xff]  ;;  %v27_v2 = vld [vmem:[%s273_s1 + $0x20] sm:$0xff] }
   0x2   :  { %149 = vmatpush.msk.msra.mxu2 %vm41_vm0, %v29_v0  ;;  %143 = vmatpush.msk.msra.mxu0 %vm41_vm0, %v29_v0  ;;  %v77_v3 = vld [vmem:[%s275_s3 + $0x18] sm:$0x1] }
   0x3   :  { %v26_v4 = vld [vmem:[%s273_s1 + $0x18] sm:$0xff]  ;;  %156 = vmatpush.msk.msra.mxu3 %vm89_vm1, %v77_v3  ;;  %146 = vmatpush.msk.msra.mxu1 %vm89_vm1, %v77_v3 }
   0x4   :  { %150 = vmatpush.msra.mxu2 %v28_v1  ;;  %55 = vmatpush.msra.mxu0 %v28_v1 }
   0x5   :  { %10 = vsyncpa [#allocation3], 0  ;;  %v25_v5 = vld [vmem:[%s273_s1 + $0x10] sm:$0xff]  ;;  %v24_v6 = vld [vmem:[%s273_s1 + $0x8] sm:$0xff]  ;;  %vm34_vm2 = vcmask 408576   ;;  %vm82_vm4 = vcmask 203776  }
   0x6   :  { %151 = vmatpush.msra.mxu2 %v27_v2  ;;  %56 = vmatpush.msra.mxu0 %v27_v2  ;;  %v23_v7 = vld [vmem:[%s273_s1] sm:$0xff]  ;;  %v22_v8 = vld [vmem:[%s272_s0 + $0x8] sm:$0xff]  ;;  %v76_v10 = vld [vmem:[%s275_s3 + $0x10] sm:$0xff]  ;;  %vm122_vm7 = vcmask 80896   ;;  %s131_s23 = sshll.u32 %s277_s5, 4  ;;  %s193_s24 = smov 8   ;;  %s132_s23 = int_to_ptr.hbm [resolvable:$true] %s131_s23 }
   0x7   :  { %v21_v9 = vld [vmem:[%s272_s0] sm:$0xff]  ;;  %157 = vmatpush.msra.mxu3 %v76_v10  ;;  %106 = vmatpush.msra.mxu1 %v76_v10  ;;  %v75_v11 = vld [vmem:[%s275_s3 + $0x8] sm:$0xff] }
   0x8   :  { %152 = vmatpush.msra.mxu2 %v26_v4  ;;  %57 = vmatpush.msra.mxu0 %v26_v4  ;;  %v74_v12 = vld [vmem:[%s275_s3] sm:$0xff] }
   0x9   :  { %158 = vmatpush.msra.mxu3 %v75_v11  ;;  %107 = vmatpush.msra.mxu1 %v75_v11  ;;  %v163_v13 = vld [vmem:[%s274_s2] ss:$0 sm:$0xff]  ;;  %s191_s2 = smov [#allocation2]  }
   0xa   :  { %153 = vmatpush.msra.mxu2 %v25_v5  ;;  %58 = vmatpush.msra.mxu0 %v25_v5  ;;  %v164_v22 = vld [vmem:[%s276_s4] ss:$0 sm:$0xff]  ;;  %s129_s20 = sshll.u32 %s191_s2, 4  ;;  %s192_s4 = smov 128   ;;  %s130_s20 = int_to_ptr.vmem [resolvable:$true] %s129_s20 }
   0xb   :  { %159 = vmatpush.msra.mxu3 %v74_v12  ;;  %108 = vmatpush.msra.mxu1 %v74_v12 }
   0xc   :  { %154 = vmatpush.msra.mxu2 %v24_v6  ;;  %59 = vmatpush.msra.mxu0 %v24_v6 }
   0xe   :  { %155 = vmatpush.msra.mxu2 %v23_v7  ;;  %60 = vmatpush.msra.mxu0 %v23_v7 }
   0xf   :  { %145 = vmatmul.msk.f32.vlgmr.msra.gmra.mxu2 %vm34_vm2, %v22_v8  ;;  %144 = vmatmul.msk.f32.vlgmr.msra.gmra.mxu0 %vm34_vm2, %v21_v9 }
  0x8c   :  { %v62_v14 = vpop.f32.mrf.mxu0 }
  0x8d   :  { %v63_v15 = vadd.f32 %v163_v13, %v62_v14 }
  0x8f   :  { %v70_v16 = vmul.f32 0.01, %v63_v15  ;;  %vm68_vm3 = vcmp.gt.f32.partialorder %v63_v15, 0.0 }
  0x91   :  { %v72_v17 = vsel %vm68_vm3, %v63_v15, %v70_v16 }
  0x92   :  { %v65_v18 = vpop.f32.mrf.mxu2  ;;  %147 = vmatmul.msk.f32.vlgmr.msra.gmra.mxu1 %vm82_vm4, %v72_v17 }
  0x93   :  { %v66_v19 = vadd.f32 %v163_v13, %v65_v18 }
  0x95   :  { %v71_v20 = vmul.f32 0.01, %v66_v19  ;;  %vm69_vm5 = vcmp.gt.f32.partialorder %v66_v19, 0.0 }
  0x97   :  { %v73_v21 = vsel %vm69_vm5, %v66_v19, %v71_v20 }
  0x98   :  { %148 = vmatmul.msk.f32.vlgmr.msra.gmra.mxu3 %vm82_vm4, %v73_v21 }
 0x10f   :  { %v110_v23 = vpop.f32.mrf.mxu1 }
 0x110   :  { %v111_v24 = vadd.f32 %v164_v22, %v110_v23 }
 0x112   :  { %vm116_vm6 = vcmp.gt.f32.partialorder %v111_v24, 0.0  ;;  %v118_v25 = vmul.f32 0.01, %v111_v24 }
 0x114   :  { %v120_v26 = vsel %vm116_vm6, %v111_v24, %v118_v25 }
 0x115   :  { %123 = vst.msk [vmem:[#allocation2] sm:$0xff] %vm122_vm7, %v120_v26 }
 0x11b   :  { %v113_v27 = vpop.f32.mrf.mxu3 }
 0x11c   :  { %v114_v28 = vadd.f32 %v164_v22, %v113_v27 }
 0x11e   :  { %vm117_vm8 = vcmp.gt.f32.partialorder %v114_v28, 0.0  ;;  %v119_v29 = vmul.f32 0.01, %v114_v28 }
 0x120   :  { %v121_v30 = vsel %vm117_vm8, %v114_v28, %v119_v29 }
 0x121   :  { %124 = vst.msk [vmem:[#allocation2 + $0x8] sm:$0xff] %vm122_vm7, %v121_v30 }
 0x122   :  { %137 = dma.vmem_to_hbm [thread:$0]  %s130_s20, 256, %s132_s23, [#allocation3], %s192_s4, %s192_s4, %s193_s24  }
 0x123   :  { %189 = dma.done.wait [#allocation3], 256  }
 0x124   :  { %190 = vsyncadd [#allocation3], 4294967040 }
 0x125   :  { %142 = vsyncpa [#allocation3], 1 }

</bundles_post_ra>
